<compile_context>
chip_gen: v7x
topology: tpu7x:2x2x1
jax: 0.10.0
libtpu: 0.0.40
codegen_flags: <defaults>
</compile_context>

<pallas_src>
import jax
import jax.numpy as jnp
from jax.experimental import pallas as pl
from jax.experimental.pallas import tpu as pltpu


def all_encoder_kernel(pn_ref, traj_ref, cp_ref,
                       w1a_ref, w1b_ref, w1c_ref, b1_ref,
                       w2_ref, b2_ref,
                       wh_ref, bh_ref,
                       noise_ref, out_ref):
    # mlp1 split row-wise over the three input feature slabs (avoids wrapper concat)
    h = (jnp.dot(pn_ref[...],   w1a_ref[...], preferred_element_type=jnp.float32)
         + jnp.dot(traj_ref[...], w1b_ref[...], preferred_element_type=jnp.float32)
         + jnp.dot(cp_ref[...],  w1c_ref[...], preferred_element_type=jnp.float32)
         + b1_ref[...])
    # leaky_relu (PyTorch default negative_slope = 0.01)
    h = jnp.where(h > 0, h, 0.01 * h)

    # mlp2
    f = jnp.dot(h, w2_ref[...], preferred_element_type=jnp.float32) + b2_ref[...]

    # fused mu||logvar head: one 128-lane-wide matmul
    head = jnp.dot(f, wh_ref[...], preferred_element_type=jnp.float32) + bh_ref[...]
    z_dim = noise_ref.shape[-1]
    mu = head[:, :z_dim]
    lv = head[:, z_dim:]

    # reparameterization: z = mu + exp(logvar / 2) * noise
    z = mu + jnp.exp(lv * 0.5) * noise_ref[...]

    # single lane-dense output slab: [z | mu | logvar]  -> (TB, 3*Z)
    out_ref[...] = jnp.concatenate([z, mu, lv], axis=-1)


def prepare_params(params, pcd_feat_dim, traj_feat_dim):
    """One-time host-side re-layout: split w1 row-wise, fuse mu/logvar heads."""
    w1, b1, w2, b2, wmu, bmu, wlv, blv = params
    w1a = w1[:pcd_feat_dim]
    w1b = w1[pcd_feat_dim:pcd_feat_dim + traj_feat_dim]
    w1c = w1[pcd_feat_dim + traj_feat_dim:]
    wh = jnp.concatenate([wmu, wlv], axis=1)          # (Z, 2Z)
    bh = jnp.concatenate([bmu, blv], axis=1)          # (1, 2Z)
    return (w1a, w1b, w1c, b1, w2, b2, wh, bh)


def all_encoder_forward(pn_feat, wpt_feats, cp_feat, kparams, noise):
    """pn_feat: (B, pcd), wpt_feats: (B, T, Dw), cp_feat: (B, cp), noise: (B, Z)."""
    B = pn_feat.shape[0]
    traj_feat = wpt_feats.reshape(B, -1)              # cheap reshape, no HBM concat

    w1a, w1b, w1c, b1, w2, b2, wh, bh = kparams
    Z = noise.shape[-1]

    # Batch tiling: whole batch in one tile when small, otherwise 128-row tiles
    # (multiple of 8) so weights stay resident while activation tiles pipeline.
    TB = B if B <= 128 else 128
    grid = (pl.cdiv(B, TB),)

    def act_spec(d):
        return pl.BlockSpec((TB, d), lambda i: (i, 0))

    def wt_spec(shape):
        return pl.BlockSpec(shape, lambda i: tuple(0 for _ in shape))

    out = pl.pallas_call(
        all_encoder_kernel,
        out_shape=jax.ShapeDtypeStruct((B, 3 * Z), jnp.float32),
        grid=grid,
        in_specs=[
            act_spec(pn_feat.shape[1]),
            act_spec(traj_feat.shape[1]),
            act_spec(cp_feat.shape[1]),
            wt_spec(w1a.shape), wt_spec(w1b.shape), wt_spec(w1c.shape), wt_spec(b1.shape),
            wt_spec(w2.shape), wt_spec(b2.shape),
            wt_spec(wh.shape), wt_spec(bh.shape),
            act_spec(Z),
        ],
        out_specs=pl.BlockSpec((TB, 3 * Z), lambda i: (i, 0)),
        compiler_params=pltpu.CompilerParams(dimension_semantics=("parallel",)),
    )(pn_feat, traj_feat, cp_feat, w1a, w1b, w1c, b1, w2, b2, wh, bh, noise)

    z = out[:, :Z]
    mu = out[:, Z:2 * Z]
    logvar = out[:, 2 * Z:]
    return z, mu, logvar


def make_params(key, pcd_feat_dim, traj_feat_dim, cp_feat_dim, hidden_dim, z_feat_dim):
    """Deterministic synthetic parameters; weights stored as [in, out]."""
    din = pcd_feat_dim + traj_feat_dim + cp_feat_dim
    ks = jax.random.split(key, 8)

    def lin(kw, kb, fan_in, fan_out):
        bound = 1.0 / jnp.sqrt(fan_in)
        w = jax.random.uniform(kw, (fan_in, fan_out), jnp.float32, -bound, bound)
        b = jax.random.uniform(kb, (1, fan_out), jnp.float32, -bound, bound)
        return w, b

    w1, b1 = lin(ks[0], ks[1], din, hidden_dim)
    w2, b2 = lin(ks[2], ks[3], hidden_dim, z_feat_dim)
    wmu, bmu = lin(ks[4], ks[5], z_feat_dim, z_feat_dim)
    wlv, blv = lin(ks[6], ks[7], z_feat_dim, z_feat_dim)
    return (w1, b1, w2, b2, wmu, bmu, wlv, blv)


if __name__ == "__main__":
    # Small shapes consistent with the module defaults.
    pcd_feat_dim, traj_feat_dim, cp_feat_dim = 128, 128, 64
    hidden_dim, z_feat_dim = 128, 64
    batch = 8
    num_steps, wpt_dim = 4, traj_feat_dim // 4        # wpt_feats reshape -> 128

    key = jax.random.PRNGKey(0)
    k_p, k_pn, k_wpt, k_cp, k_noise = jax.random.split(key, 5)

    params = make_params(k_p, pcd_feat_dim, traj_feat_dim, cp_feat_dim,
                         hidden_dim, z_feat_dim)
    kparams = prepare_params(params, pcd_feat_dim, traj_feat_dim)

    pn_feat = jax.random.normal(k_pn, (batch, pcd_feat_dim), jnp.float32)
    wpt_feats = jax.random.normal(k_wpt, (batch, num_steps, wpt_dim), jnp.float32)
    cp_feat = jax.random.normal(k_cp, (batch, cp_feat_dim), jnp.float32)
    # torch.randn(*mu.shape) equivalent, generated deterministically in-script.
    noise = jax.random.normal(k_noise, (batch, z_feat_dim), jnp.float32)

    z, mu, logvar = all_encoder_forward(pn_feat, wpt_feats, cp_feat, kparams, noise)
    jax.block_until_ready((z, mu, logvar))

    # Pure-JAX reference check against the original (unfused) parameterization.
    w1, b1, w2, b2, wmu, bmu, wlv, blv = params
    x = jnp.concatenate([pn_feat, wpt_feats.reshape(batch, -1), cp_feat], axis=-1)
    h = x @ w1 + b1
    h = jnp.where(h > 0, h, 0.01 * h)
    f = h @ w2 + b2
    mu_ref = f @ wmu + bmu
    lv_ref = f @ wlv + blv
    z_ref = mu_ref + jnp.exp(lv_ref / 2.0) * noise

    assert jnp.allclose(mu, mu_ref, atol=1e-5, rtol=1e-5)
    assert jnp.allclose(logvar, lv_ref, atol=1e-5, rtol=1e-5)
    assert jnp.allclose(z, z_ref, atol=1e-5, rtol=1e-5)

    print("KERNEL_OK")
</pallas_src>

<mosaic_0001>
module attributes {stable_mosaic.version = 11 : i64} {
  func.func @all_encoder_kernel(%arg0: i32, %arg1: memref<8x128xf32, #tpu.memory_space<vmem>>, %arg2: memref<8x128xf32, #tpu.memory_space<vmem>>, %arg3: memref<8x64xf32, #tpu.memory_space<vmem>>, %arg4: memref<128x128xf32, #tpu.memory_space<vmem>>, %arg5: memref<128x128xf32, #tpu.memory_space<vmem>>, %arg6: memref<64x128xf32, #tpu.memory_space<vmem>>, %arg7: memref<1x128xf32, #tpu.memory_space<vmem>>, %arg8: memref<128x64xf32, #tpu.memory_space<vmem>>, %arg9: memref<1x64xf32, #tpu.memory_space<vmem>>, %arg10: memref<64x128xf32, #tpu.memory_space<vmem>>, %arg11: memref<1x128xf32, #tpu.memory_space<vmem>>, %arg12: memref<8x64xf32, #tpu.memory_space<vmem>>, %arg13: memref<8x192xf32, #tpu.memory_space<vmem>>) attributes {dimension_semantics = [#tpu.dimension_semantics<parallel>], iteration_bounds = array<i64: 1>, scalar_prefetch = 0 : i64, scratch_operands = 0 : i64, tpu.core_type = #tpu.core_type<tc>, window_params = [{transform_indices = @transform_0, window_bounds = array<i64: 8, 128>}, {transform_indices = @transform_1, window_bounds = array<i64: 8, 128>}, {transform_indices = @transform_2, window_bounds = array<i64: 8, 64>}, {pipeline_mode = #tpu.pipeline_mode<synchronous>, transform_indices = @transform_3, window_bounds = array<i64: 128, 128>}, {pipeline_mode = #tpu.pipeline_mode<synchronous>, transform_indices = @transform_4, window_bounds = array<i64: 128, 128>}, {pipeline_mode = #tpu.pipeline_mode<synchronous>, transform_indices = @transform_5, window_bounds = array<i64: 64, 128>}, {pipeline_mode = #tpu.pipeline_mode<synchronous>, transform_indices = @transform_6, window_bounds = array<i64: 1, 128>}, {pipeline_mode = #tpu.pipeline_mode<synchronous>, transform_indices = @transform_7, window_bounds = array<i64: 128, 64>}, {pipeline_mode = #tpu.pipeline_mode<synchronous>, transform_indices = @transform_8, window_bounds = array<i64: 1, 64>}, {pipeline_mode = #tpu.pipeline_mode<synchronous>, transform_indices = @transform_9, window_bounds = array<i64: 64, 128>}, {pipeline_mode = #tpu.pipeline_mode<synchronous>, transform_indices = @transform_10, window_bounds = array<i64: 1, 128>}, {transform_indices = @transform_11, window_bounds = array<i64: 8, 64>}, {transform_indices = @transform_12, window_bounds = array<i64: 8, 192>}]} {
    %c0 = arith.constant 0 : index
    %c0_0 = arith.constant 0 : index
    %0 = vector.load %arg1[%c0, %c0_0] : memref<8x128xf32, #tpu.memory_space<vmem>>, vector<8x128xf32>
    %c0_1 = arith.constant 0 : index
    %c0_2 = arith.constant 0 : index
    %1 = vector.load %arg4[%c0_1, %c0_2] : memref<128x128xf32, #tpu.memory_space<vmem>>, vector<128x128xf32>
    %cst = arith.constant dense<0.000000e+00> : vector<8x128xf32>
    %2 = tpu.matmul %0, %1, %cst {dimension_numbers = #tpu.dot_dimension_numbers<[1], [0], [0], [1], [0, 0, 1, 1], [], []>} : vector<8x128xf32>, vector<128x128xf32>, vector<8x128xf32> -> vector<8x128xf32>
    %c0_3 = arith.constant 0 : index
    %c0_4 = arith.constant 0 : index
    %3 = vector.load %arg2[%c0_3, %c0_4] : memref<8x128xf32, #tpu.memory_space<vmem>>, vector<8x128xf32>
    %c0_5 = arith.constant 0 : index
    %c0_6 = arith.constant 0 : index
    %4 = vector.load %arg5[%c0_5, %c0_6] : memref<128x128xf32, #tpu.memory_space<vmem>>, vector<128x128xf32>
    %cst_7 = arith.constant dense<0.000000e+00> : vector<8x128xf32>
    %5 = tpu.matmul %3, %4, %cst_7 {dimension_numbers = #tpu.dot_dimension_numbers<[1], [0], [0], [1], [0, 0, 1, 1], [], []>} : vector<8x128xf32>, vector<128x128xf32>, vector<8x128xf32> -> vector<8x128xf32>
    %6 = arith.addf %2, %5 : vector<8x128xf32>
    %c0_8 = arith.constant 0 : index
    %c0_9 = arith.constant 0 : index
    %7 = vector.load %arg3[%c0_8, %c0_9] : memref<8x64xf32, #tpu.memory_space<vmem>>, vector<8x64xf32>
    %c0_10 = arith.constant 0 : index
    %c0_11 = arith.constant 0 : index
    %8 = vector.load %arg6[%c0_10, %c0_11] : memref<64x128xf32, #tpu.memory_space<vmem>>, vector<64x128xf32>
    %cst_12 = arith.constant dense<0.000000e+00> : vector<8x128xf32>
    %9 = tpu.matmul %7, %8, %cst_12 {dimension_numbers = #tpu.dot_dimension_numbers<[1], [0], [0], [1], [0, 0, 1, 1], [], []>} : vector<8x64xf32>, vector<64x128xf32>, vector<8x128xf32> -> vector<8x128xf32>
    %10 = arith.addf %6, %9 : vector<8x128xf32>
    %c0_13 = arith.constant 0 : index
    %c0_14 = arith.constant 0 : index
    %11 = vector.load %arg7[%c0_13, %c0_14] : memref<1x128xf32, #tpu.memory_space<vmem>>, vector<1x128xf32>
    %12 = vector.broadcast %11 : vector<1x128xf32> to vector<8x128xf32>
    %13 = arith.addf %10, %12 : vector<8x128xf32>
    %cst_15 = arith.constant 0.000000e+00 : f32
    %14 = vector.broadcast %cst_15 : f32 to vector<8x128xf32>
    %15 = arith.cmpf ogt, %13, %14 : vector<8x128xf32>
    %cst_16 = arith.constant 0.00999999977 : f32
    %16 = vector.broadcast %cst_16 : f32 to vector<8x128xf32>
    %17 = arith.mulf %16, %13 : vector<8x128xf32>
    %18 = arith.select %15, %13, %17 : vector<8x128xi1>, vector<8x128xf32>
    %c0_17 = arith.constant 0 : index
    %c0_18 = arith.constant 0 : index
    %19 = vector.load %arg8[%c0_17, %c0_18] : memref<128x64xf32, #tpu.memory_space<vmem>>, vector<128x64xf32>
    %cst_19 = arith.constant dense<0.000000e+00> : vector<8x64xf32>
    %20 = tpu.matmul %18, %19, %cst_19 {dimension_numbers = #tpu.dot_dimension_numbers<[1], [0], [0], [1], [0, 0, 1, 1], [], []>} : vector<8x128xf32>, vector<128x64xf32>, vector<8x64xf32> -> vector<8x64xf32>
    %c0_20 = arith.constant 0 : index
    %c0_21 = arith.constant 0 : index
    %21 = vector.load %arg9[%c0_20, %c0_21] : memref<1x64xf32, #tpu.memory_space<vmem>>, vector<1x64xf32>
    %22 = vector.broadcast %21 : vector<1x64xf32> to vector<8x64xf32>
    %23 = arith.addf %20, %22 : vector<8x64xf32>
    %c0_22 = arith.constant 0 : index
    %c0_23 = arith.constant 0 : index
    %24 = vector.load %arg10[%c0_22, %c0_23] : memref<64x128xf32, #tpu.memory_space<vmem>>, vector<64x128xf32>
    %cst_24 = arith.constant dense<0.000000e+00> : vector<8x128xf32>
    %25 = tpu.matmul %23, %24, %cst_24 {dimension_numbers = #tpu.dot_dimension_numbers<[1], [0], [0], [1], [0, 0, 1, 1], [], []>} : vector<8x64xf32>, vector<64x128xf32>, vector<8x128xf32> -> vector<8x128xf32>
    %c0_25 = arith.constant 0 : index
    %c0_26 = arith.constant 0 : index
    %26 = vector.load %arg11[%c0_25, %c0_26] : memref<1x128xf32, #tpu.memory_space<vmem>>, vector<1x128xf32>
    %27 = vector.broadcast %26 : vector<1x128xf32> to vector<8x128xf32>
    %28 = arith.addf %25, %27 : vector<8x128xf32>
    %29 = vector.extract_strided_slice %28 {offsets = [0, 0], sizes = [8, 64], strides = [1, 1]} : vector<8x128xf32> to vector<8x64xf32>
    %30 = vector.extract_strided_slice %28 {offsets = [0, 64], sizes = [8, 64], strides = [1, 1]} : vector<8x128xf32> to vector<8x64xf32>
    %cst_27 = arith.constant 5.000000e-01 : f32
    %31 = vector.broadcast %cst_27 : f32 to vector<8x64xf32>
    %32 = arith.mulf %30, %31 : vector<8x64xf32>
    %33 = math.exp %32 : vector<8x64xf32>
    %c0_28 = arith.constant 0 : index
    %c0_29 = arith.constant 0 : index
    %34 = vector.load %arg12[%c0_28, %c0_29] : memref<8x64xf32, #tpu.memory_space<vmem>>, vector<8x64xf32>
    %35 = arith.mulf %33, %34 : vector<8x64xf32>
    %36 = arith.addf %29, %35 : vector<8x64xf32>
    %37 = tpu.concatenate %36, %29, %30 in 1 : vector<8x64xf32>, vector<8x64xf32>, vector<8x64xf32> -> vector<8x192xf32>
    %c0_30 = arith.constant 0 : index
    %c0_31 = arith.constant 0 : index
    %38 = vector.load %arg13[%c0_30, %c0_31] : memref<8x192xf32, #tpu.memory_space<vmem>>, vector<8x192xf32>
    tpu.vector_store %arg13[%c0_30, %c0_31], %37 {strides = array<i32>} : memref<8x192xf32, #tpu.memory_space<vmem>>, vector<8x192xf32>,
    return
  }
  func.func @transform_0(%arg0: i32) -> (i32, i32) {
    %c0_i32 = arith.constant 0 : i32
    %c0_i32_0 = arith.constant 0 : i32
    return %arg0, %c0_i32 : i32, i32
  }
  func.func @transform_1(%arg0: i32) -> (i32, i32) {
    %c0_i32 = arith.constant 0 : i32
    %c0_i32_0 = arith.constant 0 : i32
    return %arg0, %c0_i32 : i32, i32
  }
  func.func @transform_2(%arg0: i32) -> (i32, i32) {
    %c0_i32 = arith.constant 0 : i32
    %c0_i32_0 = arith.constant 0 : i32
    return %arg0, %c0_i32 : i32, i32
  }
  func.func @transform_3(%arg0: i32) -> (i32, i32) {
    %c0_i32 = arith.constant 0 : i32
    %c0_i32_0 = arith.constant 0 : i32
    %c0_i32_1 = arith.constant 0 : i32
    return %c0_i32, %c0_i32_0 : i32, i32
  }
  func.func @transform_4(%arg0: i32) -> (i32, i32) {
    %c0_i32 = arith.constant 0 : i32
    %c0_i32_0 = arith.constant 0 : i32
    %c0_i32_1 = arith.constant 0 : i32
    return %c0_i32, %c0_i32_0 : i32, i32
  }
  func.func @transform_5(%arg0: i32) -> (i32, i32) {
    %c0_i32 = arith.constant 0 : i32
    %c0_i32_0 = arith.constant 0 : i32
    %c0_i32_1 = arith.constant 0 : i32
    return %c0_i32, %c0_i32_0 : i32, i32
  }
  func.func @transform_6(%arg0: i32) -> (i32, i32) {
    %c0_i32 = arith.constant 0 : i32
    %c0_i32_0 = arith.constant 0 : i32
    %c0_i32_1 = arith.constant 0 : i32
    return %c0_i32, %c0_i32_0 : i32, i32
  }
  func.func @transform_7(%arg0: i32) -> (i32, i32) {
    %c0_i32 = arith.constant 0 : i32
    %c0_i32_0 = arith.constant 0 : i32
    %c0_i32_1 = arith.constant 0 : i32
    return %c0_i32, %c0_i32_0 : i32, i32
  }
  func.func @transform_8(%arg0: i32) -> (i32, i32) {
    %c0_i32 = arith.constant 0 : i32
    %c0_i32_0 = arith.constant 0 : i32
    %c0_i32_1 = arith.constant 0 : i32
    return %c0_i32, %c0_i32_0 : i32, i32
  }
  func.func @transform_9(%arg0: i32) -> (i32, i32) {
    %c0_i32 = arith.constant 0 : i32
    %c0_i32_0 = arith.constant 0 : i32
    %c0_i32_1 = arith.constant 0 : i32
    return %c0_i32, %c0_i32_0 : i32, i32
  }
  func.func @transform_10(%arg0: i32) -> (i32, i32) {
    %c0_i32 = arith.constant 0 : i32
    %c0_i32_0 = arith.constant 0 : i32
    %c0_i32_1 = arith.constant 0 : i32
    return %c0_i32, %c0_i32_0 : i32, i32
  }
  func.func @transform_11(%arg0: i32) -> (i32, i32) {
    %c0_i32 = arith.constant 0 : i32
    %c0_i32_0 = arith.constant 0 : i32
    return %arg0, %c0_i32 : i32, i32
  }
  func.func @transform_12(%arg0: i32) -> (i32, i32) {
    %c0_i32 = arith.constant 0 : i32
    %c0_i32_0 = arith.constant 0 : i32
    return %arg0, %c0_i32 : i32, i32
  }
}

</mosaic_0001>

<bundles_post_ra>
// kernel: tpu_custom_call.1
= control target key start
LH: loop header
LB: loop body
LE: loop exit
PB: predicated region body
PF: predicated region fallthrough
CT: control target
= control target key end

     0   :  { %17 = vsyncpa [#allocation3], 0  ;;  %s1342_s0 = inlined_call_operand.vmem [shape: f32[8,128], index: 0, kind: input, shape index: {}]   ;;  %s1343_s1 = inlined_call_operand.hbm [shape: f32[8,128], index: 1, kind: input, shape index: {}]   ;;  %s1344_s2 = inlined_call_operand.hbm [shape: f32[8,64], index: 2, kind: input, shape index: {}]   ;;  %s1345_s3 = inlined_call_operand.vmem [shape: f32[128,128], index: 3, kind: input, shape index: {}]   ;;  %s1346_s4 = inlined_call_operand.hbm [shape: f32[128,128], index: 4, kind: input, shape index: {}]   ;;  %s1347_s5 = inlined_call_operand.vmem [shape: f32[64,128], index: 5, kind: input, shape index: {}]   ;;  %s1348_s6 = inlined_call_operand.vmem [shape: f32[1,128], index: 6, kind: input, shape index: {}]   ;;  %s1349_s7 = inlined_call_operand.vmem [shape: f32[128,64], index: 7, kind: input, shape index: {}]   ;;  %s1350_s8 = inlined_call_operand.vmem [shape: f32[1,64], index: 8, kind: input, shape index: {}]   ;;  %s1351_s9 = inlined_call_operand.hbm [shape: f32[64,128], index: 9, kind: input, shape index: {}]   ;;  %s1352_s10 = inlined_call_operand.vmem [shape: f32[1,128], index: 10, kind: input, shape index: {}]   ;;  %s1353_s11 = inlined_call_operand.vmem [shape: f32[8,64], index: 11, kind: input, shape index: {}]   ;;  %s1354_s12 = inlined_call_operand.hbm [shape: f32[8,192], index: 12, kind: output, shape index: {}]  }
   0x1   :  { %18 = vsyncpa [#allocation6], 0 }
   0x2   :  { %19 = vsyncpa [#allocation9], 0 }
   0x3   :  { %20 = vsyncpa [#allocation4], 0  ;;  %s1025_s21 = smov [#allocation5]   ;;  %s1026_s23 = smov [#allocation2]  }
   0x4   :  { %s39_s22 = sshll.u32 %s1025_s21, 4  ;;  %s29_s24 = sshll.u32 %s1026_s23, 4  ;;  %s40_s22 = int_to_ptr.vmem [resolvable:$true] %s39_s22  ;;  %s30_s24 = int_to_ptr.vmem [resolvable:$true] %s29_s24 }
   0x5   :  { %s907_s27 = scalar_lea.hbm %s1344_s2, 128 }
   0x6   :  { %p908_p0 = scmp.ne.s32.totalorder %s1344_s2, %s907_s27  ;;  %p911_p1 = scmp.lt.u32.totalorder %s907_s27, %s1344_s2 }
   0x8   :  { %p913_p2 = pnand %p911_p1, %p908_p0 }
   0xa   :  { %916 = shalt.err (!%p913_p2)
}
   0xb   :  { %s917_s14 = scalar_lea.vmem %s40_s22, 128  ;;  %p922_p4 = scmp.lt.s32.totalorder %s40_s22, %s40_s22 }
   0xc   :  { %p918_p3 = scmp.ne.s32.totalorder %s40_s22, %s917_s14  ;;  %p923_p5 = scmp.lt.s32.totalorder %s917_s14, %s917_s14 }
   0xe   :  { %p924_p6 = por %p923_p5, %p922_p4 }
  0x10   :  { %p925_p7 = pnand %p924_p6, %p918_p3 }
  0x12   :  { %928 = shalt.err (!%p925_p7)
}
  0x13   :  { %42 = dma.hbm_to_vmem [thread:$0]  %s1344_s2, 128, %s40_s22, [#allocation6]  }
  0x14   :  { %s929_s19 = scalar_lea.hbm %s1343_s1, 128 }
  0x15   :  { %p930_p8 = scmp.ne.s32.totalorder %s1343_s1, %s929_s19  ;;  %p933_p9 = scmp.lt.u32.totalorder %s929_s19, %s1343_s1 }
  0x17   :  { %p935_p10 = pnand %p933_p9, %p930_p8 }
  0x19   :  { %938 = shalt.err (!%p935_p10)
}
  0x1a   :  { %s939_s26 = scalar_lea.vmem %s30_s24, 128  ;;  %p944_p12 = scmp.lt.s32.totalorder %s30_s24, %s30_s24 }
  0x1b   :  { %p940_p11 = scmp.ne.s32.totalorder %s30_s24, %s939_s26  ;;  %p945_p13 = scmp.lt.s32.totalorder %s939_s26, %s939_s26 }
  0x1d   :  { %p946_p0 = por %p945_p13, %p944_p12 }
  0x1f   :  { %p947_p1 = pnand %p946_p0, %p940_p11 }
  0x21   :  { %950 = shalt.err (!%p947_p1)
}
  0x22   :  { %32 = dma.hbm_to_vmem [thread:$0]  %s1343_s1, 128, %s30_s24, [#allocation3]  }
  0x23   :  { %s1027_s27 = smov [#allocation7]   ;;  %s951_s13 = scalar_lea.hbm %s1346_s4, 2048 }
  0x24   :  { %s50_s28 = sshll.u32 %s1027_s27, 4  ;;  %p952_p2 = scmp.ne.s32.totalorder %s1346_s4, %s951_s13  ;;  %s51_s28 = int_to_ptr.vmem [resolvable:$true] %s50_s28 }
  0x25   :  { %p955_p3 = scmp.lt.u32.totalorder %s951_s13, %s1346_s4 }
  0x27   :  { %p957_p4 = pnand %p955_p3, %p952_p2 }
  0x29   :  { %960 = shalt.err (!%p957_p4)
}
  0x2a   :  { %s961_s18 = scalar_lea.vmem %s51_s28, 2048  ;;  %p966_p6 = scmp.lt.s32.totalorder %s51_s28, %s51_s28 }
  0x2b   :  { %p962_p5 = scmp.ne.s32.totalorder %s51_s28, %s961_s18  ;;  %p967_p7 = scmp.lt.s32.totalorder %s961_s18, %s961_s18 }
  0x2d   :  { %p968_p8 = por %p967_p7, %p966_p6 }
  0x2f   :  { %p969_p9 = pnand %p968_p8, %p962_p5 }
  0x31   :  { %972 = shalt.err (!%p969_p9)
}
  0x32   :  { %s1028_s1 = smov 128   ;;  %s1029_s24 = smov 8  }
  0x33   :  { %56 = dma.hbm_to_vmem [thread:$0]  %s1346_s4, 2048, %s51_s28, [#allocation6], %s1028_s1, %s1028_s1, %s1029_s24  }
  0x34   :  { %s1030_s21 = smov [#allocation8]   ;;  %s973_s2 = scalar_lea.hbm %s1351_s9, 1024 }
  0x35   :  { %s70_s23 = sshll.u32 %s1030_s21, 4  ;;  %p974_p10 = scmp.ne.s32.totalorder %s1351_s9, %s973_s2  ;;  %s71_s23 = int_to_ptr.vmem [resolvable:$true] %s70_s23 }
  0x36   :  { %p977_p11 = scmp.lt.u32.totalorder %s973_s2, %s1351_s9 }
  0x38   :  { %p979_p12 = pnand %p977_p11, %p974_p10 }
  0x3a   :  { %982 = shalt.err (!%p979_p12)
}
  0x3b   :  { %s983_s13 = scalar_lea.vmem %s71_s23, 1024  ;;  %p988_p0 = scmp.lt.s32.totalorder %s71_s23, %s71_s23 }
  0x3c   :  { %p984_p13 = scmp.ne.s32.totalorder %s71_s23, %s983_s13  ;;  %p989_p1 = scmp.lt.s32.totalorder %s983_s13, %s983_s13 }
  0x3e   :  { %p990_p2 = por %p989_p1, %p988_p0 }
  0x40   :  { %p991_p3 = pnand %p990_p2, %p984_p13 }
  0x42   :  { %994 = shalt.err (!%p991_p3)
}
  0x43   :  { %76 = dma.hbm_to_vmem [thread:$0]  %s1351_s9, 1024, %s71_s23, [#allocation9], %s1028_s1, %s1028_s1, %s1029_s24  }
  0x44   :  { %1017 = dma.done.wait [#allocation3], 128  }
  0x45   :  { %1018 = vsyncadd [#allocation3], 4294967168 }
  0x46   :  { %1019 = dma.done.wait [#allocation6], 2176  }
  0x47   :  { %1020 = vsyncadd [#allocation6], 4294965120 }
  0x48   :  { %1021 = dma.done.wait [#allocation9], 1024  }
  0x49   :  { %1022 = vsyncadd [#allocation9], 4294966272  ;;  %v1031_v0 = vmov 0.0|0.0   ;;  %vm1032_vm0 = vmmov 0   ;;  %v1033_v1 = vmov 0.0   ;;  %v111_v2 = vld [vmem:[#allocation7] sm:$0xff] }
  0x4a   :  { %798 = vmatprep.subr.bf16.mxu0 %v1031_v0  ;;  %822 = vmatprep.subr.bf16.mxu1 %v1031_v0  ;;  %v112_v3 = vld [vmem:[#allocation7 + $0x8] sm:$0xff]  ;;  %v94_v4 = vld [vmem:[%s1345_s3] sm:$0xff]  ;;  %v95_v6 = vld [vmem:[%s1345_s3 + $0x8] sm:$0xff]  ;;  %vm276_vm1 = vcmask 523264  }
  0x4b   :  { %687 = vmatprep.mubr.msk.f32.mxu0 %vm1032_vm0, %v1033_v1  ;;  %722 = vmatprep.mubr.msk.f32.mxu1 %vm1032_vm0, %v1033_v1  ;;  %v799_v5 = vpack.c.bf16 %v112_v3, %v111_v2  ;;  %v113_v7 = vld [vmem:[#allocation7 + $0x10] sm:$0xff]  ;;  %v114_v8 = vld [vmem:[#allocation7 + $0x18] sm:$0xff]  ;;  %v823_v9 = vpack.c.bf16 %v95_v6, %v94_v4  ;;  %v96_v10 = vld [vmem:[%s1345_s3 + $0x10] sm:$0xff] }
  0x4c   :  { %v97_v11 = vld [vmem:[%s1345_s3 + $0x18] sm:$0xff]  ;;  %v802_v12 = vpack.c.bf16 %v114_v8, %v113_v7  ;;  %v115_v14 = vld [vmem:[#allocation7 + $0x20] sm:$0xff]  ;;  %v98_v16 = vld [vmem:[%s1345_s3 + $0x20] sm:$0xff] }
  0x4d   :  { %800 = vmatpush3.bf16.msra.mxu0 %v799_v5  ;;  %824 = vmatpush3.bf16.msra.mxu1 %v823_v9  ;;  %v826_v13 = vpack.c.bf16 %v97_v11, %v96_v10  ;;  %v116_v15 = vld [vmem:[#allocation7 + $0x28] sm:$0xff]  ;;  %v99_v17 = vld [vmem:[%s1345_s3 + $0x28] sm:$0xff]  ;;  %v117_v20 = vld [vmem:[#allocation7 + $0x30] sm:$0xff] }
  0x4e   :  { %801 = vmatprep.subr.bf16.mxu0 %v1031_v0  ;;  %825 = vmatprep.subr.bf16.mxu1 %v1031_v0  ;;  %v805_v18 = vpack.c.bf16 %v116_v15, %v115_v14  ;;  %v829_v19 = vpack.c.bf16 %v99_v17, %v98_v16  ;;  %v118_v21 = vld [vmem:[#allocation7 + $0x38] sm:$0xff]  ;;  %v100_v22 = vld [vmem:[%s1345_s3 + $0x30] sm:$0xff]  ;;  %v101_v23 = vld [vmem:[%s1345_s3 + $0x38] sm:$0xff] }
  0x4f   :  { %v808_v24 = vpack.c.bf16 %v118_v21, %v117_v20  ;;  %v832_v25 = vpack.c.bf16 %v101_v23, %v100_v22  ;;  %v119_v26 = vld [vmem:[#allocation7 + $0x40] sm:$0xff]  ;;  %v120_v27 = vld [vmem:[#allocation7 + $0x48] sm:$0xff]  ;;  %v102_v28 = vld [vmem:[%s1345_s3 + $0x40] sm:$0xff] }
  0x50   :  { %v103_v29 = vld [vmem:[%s1345_s3 + $0x48] sm:$0xff]  ;;  %v811_v30 = vpack.c.bf16 %v120_v27, %v119_v26  ;;  %v121_v32 = vld [vmem:[#allocation7 + $0x50] sm:$0xff]  ;;  %v104_v34 = vld [vmem:[%s1345_s3 + $0x50] sm:$0xff] }
  0x51   :  { %803 = vmatpush3.bf16.msra.mxu0 %v802_v12  ;;  %827 = vmatpush3.bf16.msra.mxu1 %v826_v13  ;;  %v835_v31 = vpack.c.bf16 %v103_v29, %v102_v28  ;;  %v122_v33 = vld [vmem:[#allocation7 + $0x58] sm:$0xff]  ;;  %v105_v35 = vld [vmem:[%s1345_s3 + $0x58] sm:$0xff]  ;;  %v123_v38 = vld [vmem:[#allocation7 + $0x60] sm:$0xff] }
  0x52   :  { %804 = vmatprep.subr.bf16.mxu0 %v1031_v0  ;;  %828 = vmatprep.subr.bf16.mxu1 %v1031_v0  ;;  %v814_v36 = vpack.c.bf16 %v122_v33, %v121_v32  ;;  %v838_v37 = vpack.c.bf16 %v105_v35, %v104_v34  ;;  %v124_v39 = vld [vmem:[#allocation7 + $0x68] sm:$0xff]  ;;  %v106_v40 = vld [vmem:[%s1345_s3 + $0x60] sm:$0xff]  ;;  %v107_v41 = vld [vmem:[%s1345_s3 + $0x68] sm:$0xff] }
  0x53   :  { %v817_v42 = vpack.c.bf16 %v124_v39, %v123_v38  ;;  %v841_v43 = vpack.c.bf16 %v107_v41, %v106_v40  ;;  %v125_v44 = vld [vmem:[#allocation7 + $0x70] sm:$0xff]  ;;  %v126_v45 = vld [vmem:[#allocation7 + $0x78] sm:$0xff]  ;;  %v108_v46 = vld [vmem:[%s1345_s3 + $0x70] sm:$0xff] }
  0x54   :  { %v109_v47 = vld [vmem:[%s1345_s3 + $0x78] sm:$0xff]  ;;  %v820_v48 = vpack.c.bf16 %v126_v45, %v125_v44  ;;  %v268_v50 = vld [vmem:[%s1347_s5] sm:$0xff]  ;;  %v269_v51 = vld [vmem:[%s1347_s5 + $0x8] sm:$0xff] }
  0x55   :  { %806 = vmatpush3.bf16.msra.mxu0 %v805_v18  ;;  %830 = vmatpush3.bf16.msra.mxu1 %v829_v19  ;;  %v844_v49 = vpack.c.bf16 %v109_v47, %v108_v46  ;;  %v362_v52 = vld [vmem:[%s1349_s7] sm:$0xff]  ;;  %v363_v53 = vld [vmem:[%s1349_s7 + $0x8] sm:$0xff]  ;;  %v847_v55 = vpack.c.bf16 %v269_v51, %v268_v50  ;;  %v270_v57 = vld [vmem:[%s1347_s5 + $0x10] sm:$0xff] }
  0x56   :  { %807 = vmatprep.subr.bf16.mxu0 %v1031_v0  ;;  %831 = vmatprep.subr.bf16.mxu1 %v1031_v0  ;;  %v110_v54 = vld [vmem:[#allocation2] sm:$0xff]  ;;  %v271_v58 = vld [vmem:[%s1347_s5 + $0x18] sm:$0xff]  ;;  %v859_v59 = vpack.c.bf16 %v363_v53, %v362_v52  ;;  %v364_v60 = vld [vmem:[%s1349_s7 + $0x10] sm:$0xff] }
  0x57   :  { %v93_v56 = vld [vmem:[%s1342_s0] sm:$0xff]  ;;  %v365_v61 = vld [vmem:[%s1349_s7 + $0x18] sm:$0xff]  ;;  %v850_v62 = vpack.c.bf16 %v271_v58, %v270_v57  ;;  %v273_v2 = vld [vmem:[%s1347_s5 + $0x28] sm:$0xff] }
  0x58   :  { %v272_v63 = vld [vmem:[%s1347_s5 + $0x20] sm:$0xff]  ;;  %v862_v3 = vpack.c.bf16 %v365_v61, %v364_v60  ;;  %v274_v5 = vld [vmem:[%s1347_s5 + $0x30] sm:$0xff]  ;;  %v275_v6 = vld [vmem:[%s1347_s5 + $0x38] sm:$0xff]  ;;  %s1034_s5 = smov 64  }
  0x59   :  { %809 = vmatpush3.bf16.msra.mxu0 %v808_v24  ;;  %833 = vmatpush3.bf16.msra.mxu1 %v832_v25  ;;  %v853_v4 = vpack.c.bf16 %v273_v2, %v272_v63  ;;  %v856_v7 = vpack.c.bf16 %v275_v6, %v274_v5  ;;  %v267_v8 = vld [vmem:[#allocation5] sm:$0xff]  ;;  %v366_v9 = vld [vmem:[%s1349_s7 + $0x20] sm:$0xff]  ;;  %v368_v12 = vld [vmem:[%s1349_s7 + $0x30] sm:$0xff] }
  0x5a   :  { %810 = vmatprep.subr.bf16.mxu0 %v1031_v0  ;;  %834 = vmatprep.subr.bf16.mxu1 %v1031_v0  ;;  %v367_v10 = vld [vmem:[%s1349_s7 + $0x28] sm:$0xff]  ;;  %v370_v13 = vld [vmem:[%s1349_s7 + $0x40] sm:$0xff]  ;;  %v372_v17 = vld [vmem:[%s1349_s7 + $0x50] sm:$0xff] }
  0x5b   :  { %v865_v11 = vpack.c.bf16 %v367_v10, %v366_v9  ;;  %v371_v15 = vld [vmem:[%s1349_s7 + $0x48] sm:$0xff]  ;;  %v373_v18 = vld [vmem:[%s1349_s7 + $0x58] sm:$0xff]  ;;  %v374_v20 = vld [vmem:[%s1349_s7 + $0x60] sm:$0xff] }
  0x5c   :  { %v871_v16 = vpack.c.bf16 %v371_v15, %v370_v13  ;;  %v874_v19 = vpack.c.bf16 %v373_v18, %v372_v17  ;;  %v375_v21 = vld [vmem:[%s1349_s7 + $0x68] sm:$0xff]  ;;  %v376_v23 = vld [vmem:[%s1349_s7 + $0x70] sm:$0xff]  ;;  %v377_v24 = vld [vmem:[%s1349_s7 + $0x78] sm:$0xff] }
  0x5d   :  { %812 = vmatpush3.bf16.msra.mxu0 %v811_v30  ;;  %836 = vmatpush3.bf16.msra.mxu1 %v835_v31  ;;  %v877_v22 = vpack.c.bf16 %v375_v21, %v374_v20  ;;  %v880_v25 = vpack.c.bf16 %v377_v24, %v376_v23  ;;  %v455_v26 = vld [vmem:[#allocation8] sm:$0xff]  ;;  %v456_v27 = vld [vmem:[#allocation8 + $0x8] sm:$0xff]  ;;  %v457_v28 = vld [vmem:[#allocation8 + $0x10] sm:$0xff] }
  0x5e   :  { %813 = vmatprep.subr.bf16.mxu0 %v1031_v0  ;;  %837 = vmatprep.subr.bf16.mxu1 %v1031_v0  ;;  %v883_v29 = vpack.c.bf16 %v456_v27, %v455_v26  ;;  %v458_v30 = vld [vmem:[#allocation8 + $0x18] sm:$0xff]  ;;  %v459_v32 = vld [vmem:[#allocation8 + $0x20] sm:$0xff]  ;;  %v460_v33 = vld [vmem:[#allocation8 + $0x28] sm:$0xff] }
  0x5f   :  { %v886_v31 = vpack.c.bf16 %v458_v30, %v457_v28  ;;  %v889_v34 = vpack.c.bf16 %v460_v33, %v459_v32  ;;  %v582_v41 = vld [vmem:[%s1348_s6] ss:$0 sm:$0xff] }
  0x60   :  { %v461_v47 = vld [vmem:[#allocation8 + $0x30] sm:$0xff] }
  0x61   :  { %815 = vmatpush3.bf16.msra.mxu0 %v814_v36  ;;  %839 = vmatpush3.bf16.msra.mxu1 %v838_v37  ;;  %v583_v50 = vld [vmem:[%s1350_s8] ss:$0 sm:$0xff]  ;;  %s1035_s8 = smov [#allocation10]  }
  0x62   :  { %816 = vmatprep.subr.bf16.mxu0 %v1031_v0  ;;  %840 = vmatprep.subr.bf16.mxu1 %v1031_v0 }
  0x65   :  { %818 = vmatpush3.bf16.msra.mxu0 %v817_v42  ;;  %842 = vmatpush3.bf16.msra.mxu1 %v841_v43 }
  0x66   :  { %819 = vmatprep.subr.bf16.mxu0 %v1031_v0  ;;  %843 = vmatprep.subr.bf16.mxu1 %v1031_v0 }
  0x69   :  { %821 = vmatpush3.bf16.msra.mxu0 %v820_v48  ;;  %845 = vmatpush3.bf16.msra.mxu1 %v844_v49  ;;  %v462_v48 = vld [vmem:[#allocation8 + $0x38] sm:$0xff]  ;;  %v546_v49 = vld [vmem:[%s1353_s11] sm:$0xff]  ;;  %s570_s11 = sshll.u32 %s1035_s8, 4  ;;  %s571_s11 = int_to_ptr.vmem [resolvable:$true] %s570_s11 }
  0x6a   :  { %846 = vmatprep.subr.bf16.mxu0 %v1031_v0  ;;  %858 = vmatprep.subr.bf16.mxu1 %v1031_v0  ;;  %p1000_p5 = scmp.lt.s32.totalorder %s571_s11, %s571_s11 }
  0x6b   :  { %548 = vrot.lane.b32.xlu0 %v546_v49, %s1034_s5 }
  0x6c   :  { %688 = vmatmul.mubr.f32.vlgmr.msra.gmra.mrb[0].mxu0 %v110_v54  ;;  %723 = vmatmul.mubr.f32.vlgmr.msra.gmra.mrb[0].mxu1 %v93_v56  ;;  %v584_v54 = vld [vmem:[%s1352_s10] ss:$0 sm:$0xff]  ;;  %s995_s10 = scalar_lea.vmem %s571_s11, 256 }
  0x6d   :  { %848 = vmatpush3.bf16.msra.mxu0 %v847_v55  ;;  %741 = vmatprep.mubr.msk.f32.mxu0 %vm1032_vm0, %v1033_v1  ;;  %p996_p4 = scmp.ne.s32.totalorder %s571_s11, %s995_s10  ;;  %p1001_p6 = scmp.lt.s32.totalorder %s995_s10, %s995_s10 }
  0x6e   :  { %849 = vmatprep.subr.bf16.mxu0 %v1031_v0  ;;  %860 = vmatpush3.bf16.msra.mxu1 %v859_v59 }
  0x6f   :  { %776 = vmatprep.mubr.msk.f32.mxu1 %vm1032_vm0, %v1033_v1  ;;  %861 = vmatprep.subr.bf16.mxu1 %v1031_v0  ;;  %p1002_p7 = por %p1001_p6, %p1000_p5 }
  0x71   :  { %851 = vmatpush3.bf16.msra.mxu0 %v850_v62  ;;  %p1003_p8 = pnand %p1002_p7, %p996_p4 }
  0x72   :  { %852 = vmatprep.subr.bf16.mxu0 %v1031_v0  ;;  %863 = vmatpush3.bf16.msra.mxu1 %v862_v3 }
  0x73   :  { %864 = vmatprep.subr.bf16.mxu1 %v1031_v0 }
  0x75   :  { %854 = vmatpush3.bf16.msra.mxu0 %v853_v4 }
  0x76   :  { %855 = vmatprep.subr.bf16.mxu0 %v1031_v0  ;;  %866 = vmatpush3.bf16.msra.mxu1 %v865_v11 }
  0x77   :  { %867 = vmatprep.subr.bf16.mxu1 %v1031_v0 }
  0x79   :  { %857 = vmatpush3.bf16.msra.mxu0 %v856_v7 }
  0x7a   :  { %882 = vmatprep.subr.bf16.mxu0 %v1031_v0 }
  0x7c   :  { %742 = vmatmul.mubr.msk.f32.vlgmr.msra.gmra.mrb[2].mxu0 %vm276_vm1, %v267_v8 }
  0x7d   :  { %795 = vmatprep.mubr.msk.f32.mxu0 %vm1032_vm0, %v1033_v1  ;;  %v369_v1 = vld [vmem:[%s1349_s7 + $0x38] sm:$0xff]  ;;  %884 = vmatpush3.bf16.msra.mxu0 %v883_v29 }
  0x7e   :  { %v868_v14 = vpack.c.bf16 %v369_v1, %v368_v12  ;;  %885 = vmatprep.subr.bf16.mxu0 %v1031_v0 }
  0x80   :  { %869 = vmatpush3.bf16.msra.mxu1 %v868_v14 }
  0x81   :  { %870 = vmatprep.subr.bf16.mxu1 %v1031_v0  ;;  %887 = vmatpush3.bf16.msra.mxu0 %v886_v31 }
  0x82   :  { %888 = vmatprep.subr.bf16.mxu0 %v1031_v0 }
  0x84   :  { %872 = vmatpush3.bf16.msra.mxu1 %v871_v16 }
  0x85   :  { %873 = vmatprep.subr.bf16.mxu1 %v1031_v0  ;;  %890 = vmatpush3.bf16.msra.mxu0 %v889_v34 }
  0x86   :  { %891 = vmatprep.subr.bf16.mxu0 %v1031_v0 }
  0x88   :  { %875 = vmatpush3.bf16.msra.mxu1 %v874_v19 }
  0x89   :  { %876 = vmatprep.subr.bf16.mxu1 %v1031_v0 }
  0x8c   :  { %878 = vmatpush3.bf16.msra.mxu1 %v877_v22 }
  0x8d   :  { %879 = vmatprep.subr.bf16.mxu1 %v1031_v0  ;;  %v892_v0 = vpack.c.bf16 %v462_v48, %v461_v47 }
  0x8f   :  { %893 = vmatpush3.bf16.msra.mxu0 %v892_v0 }
  0x90   :  { %881 = vmatpush3.bf16.msra.mxu1 %v880_v25 }
  0xdd   :  { %v549_v60 = vpop.permute.xlu0 %548 }
 0x13f   :  { %v193_v35 = vpop.f32.mrb[0].mxu0  ;;  %v263_v37 = vpop.f32.mrb[0].mxu1 }
 0x140   :  { %v689_v36 = vpop.f32.mrb[1].mxu0  ;;  %v264_v38 = vadd.f32 %v263_v37, %v193_v35  ;;  %v724_v39 = vpop.f32.mrb[1].mxu1 }
 0x14f   :  { %v346_v40 = vpop.f32.mrb[2].mxu0 }
 0x150   :  { %v350_v42 = vadd.f32 %v346_v40, %v264_v38  ;;  %v743_v43 = vpop.f32.mrb[3].mxu0 }
 0x152   :  { %v358_v44 = vadd.f32 %v582_v41, %v350_v42 }
 0x154   :  { %v360_v45 = vmul.f32 0.01, %v358_v44  ;;  %vm359_vm2 = vcmp.gt.f32.partialorder %v358_v44, 0.0 }
 0x156   :  { %v361_v46 = vsel %vm359_vm2, %v358_v44, %v360_v45 }
 0x157   :  { %777 = vmatmul.mubr.f32.vlgmr.msra.gmra.mrb[2].mxu1 %v361_v46 }
 0x22a   :  { %v451_v51 = vpop.f32.mrb[2].mxu1 }
 0x22b   :  { %v452_v52 = vadd.f32 %v583_v50, %v451_v51  ;;  %v778_v53 = vpop.f32.mrb[3].mxu1 }
 0x22d   :  { %796 = vmatmul.mubr.msk.f32.vlgmr.msra.gmra.mrb[4].mxu0 %vm276_vm1, %v452_v52 }
 0x300   :  { %v539_v55 = vpop.f32.mrb[4].mxu0 }
 0x301   :  { %v540_v56 = vadd.f32 %v584_v54, %v539_v55  ;;  %v797_v57 = vpop.f32.mrb[5].mxu0 }
 0x303   :  { %v543_v58 = vmul.f32 0.5, %v540_v56  ;;  %558 = vrot.lane.b32.xlu1 %v540_v56, %s1034_s5 }
 0x305   :  { %v544_v59 = vmul.f32 1.442695, %v543_v58 }
 0x307   :  { %905 = vpow2.f32 %v544_v59 }
 0x311   :  { %v906_v61 = vpop.eup %905 }
 0x312   :  { %v551_v62 = vmul.f32 %v906_v61, %v549_v60 }
 0x314   :  { %553 = vrot.lane.b32.xlu0 %v551_v62, %s1034_s5 }
 0x375   :  { %v559_v63 = vpop.permute.xlu1 %558 }
 0x376   :  { %563 = vst.msk [vmem:[#allocation10 + $0x8] sm:$0xff] %vm276_vm1, %v559_v63 }
 0x386   :  { %v554_v2 = vpop.permute.xlu0 %553 }
 0x387   :  { %v556_v3 = vadd.f32 %v554_v2, %v540_v56 }
 0x389   :  { %v561_v4 = vsel %vm276_vm1, %v556_v3, %v559_v63 }
 0x38a   :  { %562 = vst [vmem:[#allocation10] sm:$0xff] %v561_v4 }
 0x38b   :  { %1006 = shalt.err (!%p1003_p8)
}
 0x38c   :  { %s1007_s30 = scalar_lea.hbm %s1354_s12, 256 }
 0x38d   :  { %p1008_p9 = scmp.ne.s32.totalorder %s1354_s12, %s1007_s30  ;;  %p1011_p10 = scmp.lt.u32.totalorder %s1007_s30, %s1354_s12 }
 0x38f   :  { %p1013_p11 = pnand %p1011_p10, %p1008_p9 }
 0x391   :  { %1016 = shalt.err (!%p1013_p11)
}
 0x392   :  { %573 = dma.vmem_to_hbm [thread:$0]  %s571_s11, 256, %s1354_s12, [#allocation4]  }
 0x393   :  { %1023 = dma.done.wait [#allocation4], 256  }
 0x394   :  { %1024 = vsyncadd [#allocation4], 4294967040 }
 0x395   :  { %577 = vsyncpa [#allocation3], 1 }
 0x396   :  { %578 = vsyncpa [#allocation6], 1 }
 0x397   :  { %579 = vsyncpa [#allocation9], 1 }
 0x398   :  { %580 = vsyncpa [#allocation4], 1 }

</bundles_post_ra>
